<compile_context>
chip_gen: v7x
topology: tpu7x:2x2x1
jax: 0.10.0
libtpu: 0.0.40
codegen_flags: <defaults>
</compile_context>

<pallas_src>
import jax
import jax.numpy as jnp
from jax.experimental import pallas as pl
from jax.experimental.pallas import tpu as pltpu


def _round_up(n, m):
    return ((n + m - 1) // m) * m


def _make_logit_kernel(eps):
    # Plain Python floats -> in-kernel literals (no captured array constants).
    lo = float(eps)
    hi = float(1.0 - eps)

    def kernel(x_ref, o_ref):
        x = x_ref[...].astype(jnp.float32)
        x = jnp.clip(x, lo, hi)
        # logit(x) = log(x) - log(1 - x); log1p(-x) is the stable form near x ~ 1.
        o_ref[...] = (jnp.log(x) - jnp.log1p(-x)).astype(o_ref.dtype)

    return kernel


def logit_pallas(x, eps=1e-6, *, lane=512, max_block_rows=1024):
    """Elementwise logit via a tiled, pipelined Pallas TPU kernel.

    Input/output have the same shape & dtype. Works for any shape by
    flattening to a lane-dense (rows, `lane`) slab (padded with 0.5, which is
    sliced off again afterwards).
    """
    orig_shape = x.shape
    total = int(x.size)
    if total == 0:
        return x

    # TODO(synk): for tiny inputs (a few KiB) a plain jnp expression fused by
    # XLA would beat a standalone Pallas launch; kept as a kernel here so the
    # Pallas path is always exercised.

    itemsize = jnp.dtype(x.dtype).itemsize
    sublane_mult = max(8, 32 // itemsize)  # 8 for f32, 16 for bf16, 32 for 8-bit

    # Lane-dense flattening: total -> (rows, lane), lane a multiple of 128.
    rows = _round_up(pl.cdiv(total, lane), sublane_mult)
    block_rows = min(max_block_rows, rows)          # multiple of sublane_mult
    rows = _round_up(rows, block_rows)              # grid tiles exactly
    padded_total = rows * lane

    flat = x.reshape(-1)
    pad = padded_total - total
    if pad:
        # 0.5 -> logit = 0: no inf/nan in the (discarded) padded region.
        flat = jnp.concatenate([flat, jnp.full((pad,), 0.5, dtype=x.dtype)])
    x2d = flat.reshape(rows, lane)

    grid = (rows // block_rows,)

    out2d = pl.pallas_call(
        _make_logit_kernel(eps),
        out_shape=jax.ShapeDtypeStruct((rows, lane), x.dtype),
        grid=grid,
        in_specs=[pl.BlockSpec((block_rows, lane), lambda i: (i, 0))],
        out_specs=pl.BlockSpec((block_rows, lane), lambda i: (i, 0)),
        compiler_params=pltpu.CompilerParams(
            dimension_semantics=("parallel",),
        ),
    )(x2d)

    return out2d.reshape(-1)[:total].reshape(orig_shape)


class LogitNeck:
    """JAX/Pallas equivalent of the PyTorch `Logit` neck (no parameters)."""

    def init_weights(self, **kwargs):
        pass

    def __call__(self, x):
        assert len(x) == 1
        return [logit_pallas(x[0], eps=1e-6)]


if __name__ == "__main__":
    key = jax.random.PRNGKey(0)
    # Probabilities-like input (logit expects values in [0, 1]); NCHW layout.
    x = jax.random.uniform(key, (2, 4, 16, 16), dtype=jnp.float32)

    neck = LogitNeck()
    out = neck([x])[0]
    out = jax.block_until_ready(out)

    # Sanity check against plain-JAX reference.
    eps = 1e-6
    xc = jnp.clip(x, eps, 1.0 - eps)
    ref = jnp.log(xc) - jnp.log1p(-xc)
    assert out.shape == x.shape and out.dtype == x.dtype
    assert jnp.allclose(out, ref, atol=1e-5, rtol=1e-5)

    # Also exercise a larger, multi-tile shape to verify the pipelined grid path.
    x_big = jax.random.uniform(jax.random.PRNGKey(1), (4, 8, 128, 256), dtype=jnp.float32)
    out_big = jax.block_until_ready(logit_pallas(x_big))
    xb = jnp.clip(x_big, eps, 1.0 - eps)
    ref_big = jnp.log(xb) - jnp.log1p(-xb)
    assert jnp.allclose(out_big, ref_big, atol=1e-5, rtol=1e-5)

    print("KERNEL_OK")
</pallas_src>

<mosaic_0001>
module attributes {stable_mosaic.version = 11 : i64} {
  func.func @kernel(%arg0: i32, %arg1: memref<8x512xf32, #tpu.memory_space<vmem>>, %arg2: memref<8x512xf32, #tpu.memory_space<vmem>>) attributes {dimension_semantics = [#tpu.dimension_semantics<parallel>], iteration_bounds = array<i64: 1>, scalar_prefetch = 0 : i64, scratch_operands = 0 : i64, tpu.core_type = #tpu.core_type<tc>, window_params = [{transform_indices = @transform_0, window_bounds = array<i64: 8, 512>}, {transform_indices = @transform_1, window_bounds = array<i64: 8, 512>}]} {
    %c0 = arith.constant 0 : index
    %c0_0 = arith.constant 0 : index
    %0 = vector.load %arg1[%c0, %c0_0] : memref<8x512xf32, #tpu.memory_space<vmem>>, vector<8x512xf32>
    %cst = arith.constant 9.99999997E-7 : f32
    %cst_1 = arith.constant 0.999998986 : f32
    %1 = vector.broadcast %cst : f32 to vector<8x512xf32>
    %2 = arith.maximumf %1, %0 : vector<8x512xf32>
    %3 = vector.broadcast %cst_1 : f32 to vector<8x512xf32>
    %4 = arith.minimumf %3, %2 : vector<8x512xf32>
    %5 = math.log %4 : vector<8x512xf32>
    %cst_2 = arith.constant 0.000000e+00 : f32
    %6 = vector.broadcast %cst_2 : f32 to vector<8x512xf32>
    %7 = arith.subf %6, %4 : vector<8x512xf32>
    %8 = math.log1p %7 : vector<8x512xf32>
    %9 = arith.subf %5, %8 : vector<8x512xf32>
    %c0_3 = arith.constant 0 : index
    %c0_4 = arith.constant 0 : index
    %10 = vector.load %arg2[%c0_3, %c0_4] : memref<8x512xf32, #tpu.memory_space<vmem>>, vector<8x512xf32>
    tpu.vector_store %arg2[%c0_3, %c0_4], %9 {strides = array<i32>} : memref<8x512xf32, #tpu.memory_space<vmem>>, vector<8x512xf32>,
    return
  }
  func.func @transform_0(%arg0: i32) -> (i32, i32) {
    %c0_i32 = arith.constant 0 : i32
    %c0_i32_0 = arith.constant 0 : i32
    return %arg0, %c0_i32 : i32, i32
  }
  func.func @transform_1(%arg0: i32) -> (i32, i32) {
    %c0_i32 = arith.constant 0 : i32
    %c0_i32_0 = arith.constant 0 : i32
    return %arg0, %c0_i32 : i32, i32
  }
}

</mosaic_0001>

<bundles_post_ra>
// kernel: tpu_custom_call.1
= control target key start
LH: loop header
LB: loop body
LE: loop exit
PB: predicated region body
PF: predicated region fallthrough
CT: control target
= control target key end

     0   :  { %6 = vsyncpa [#allocation3], 0  ;;  %s224_s0 = inlined_call_operand.hbm [shape: f32[8,512], index: 0, kind: input, shape index: {}]   ;;  %s225_s1 = inlined_call_operand.hbm [shape: f32[8,512], index: 1, kind: output, shape index: {}]  }
   0x1   :  { %7 = vsyncpa [#allocation4], 0  ;;  %s170_s6 = smov [#allocation2]   ;;  %s122_s10 = scalar_lea.hbm %s224_s0, 512 }
   0x2   :  { %s14_s7 = sshll.u32 %s170_s6, 4  ;;  %p123_p0 = scmp.ne.s32.totalorder %s224_s0, %s122_s10  ;;  %s15_s7 = int_to_ptr.vmem [resolvable:$true] %s14_s7 }
   0x3   :  { %p126_p1 = scmp.lt.u32.totalorder %s122_s10, %s224_s0 }
   0x5   :  { %p128_p2 = pnand %p126_p1, %p123_p0 }
   0x7   :  { %131 = shalt.err (!%p128_p2)
}
   0x8   :  { %s132_s15 = scalar_lea.vmem %s15_s7, 512  ;;  %p137_p4 = scmp.lt.s32.totalorder %s15_s7, %s15_s7 }
   0x9   :  { %p133_p3 = scmp.ne.s32.totalorder %s15_s7, %s132_s15  ;;  %p138_p5 = scmp.lt.s32.totalorder %s132_s15, %s132_s15 }
   0xb   :  { %p139_p6 = por %p138_p5, %p137_p4 }
   0xd   :  { %p140_p7 = pnand %p139_p6, %p133_p3 }
   0xf   :  { %143 = shalt.err (!%p140_p7)
}
  0x10   :  { %17 = dma.hbm_to_vmem [thread:$0]  %s224_s0, 512, %s15_s7, [#allocation3]  }
  0x11   :  { %166 = dma.done.wait [#allocation3], 512  }
  0x12   :  { %167 = vsyncadd [#allocation3], 4294966784  ;;  %v21_v0 = vld [vmem:[#allocation2] sm:$0xff]  ;;  %v22_v1 = vld [vmem:[#allocation2 + $0x8] sm:$0xff]  ;;  %s171_s0 = smov [#allocation5]  }
  0x13   :  { %v23_v2 = vld [vmem:[#allocation2 + $0x10] sm:$0xff]  ;;  %v25_v3 = vmax.f32 %v21_v0, 1e-06  ;;  %v26_v4 = vmax.f32 %v22_v1, 1e-06  ;;  %v24_v6 = vld [vmem:[#allocation2 + $0x18] sm:$0xff] }
  0x14   :  { %v27_v5 = vmax.f32 %v23_v2, 1e-06  ;;  %v28_v10 = vmax.f32 %v24_v6, 1e-06  ;;  %s95_s18 = sshll.u32 %s171_s0, 4  ;;  %s96_s18 = int_to_ptr.vmem [resolvable:$true] %s95_s18 }
  0x15   :  { %v29_v7 = vmin.f32 %v25_v3, 0.999999  ;;  %v30_v8 = vmin.f32 %v26_v4, 0.999999  ;;  %s144_s19 = scalar_lea.vmem %s96_s18, 512  ;;  %p149_p9 = scmp.lt.s32.totalorder %s96_s18, %s96_s18 }
  0x16   :  { %v31_v9 = vmin.f32 %v27_v5, 0.999999  ;;  %v32_v16 = vmin.f32 %v28_v10, 0.999999  ;;  %p145_p8 = scmp.ne.s32.totalorder %s96_s18, %s144_s19  ;;  %p150_p10 = scmp.lt.s32.totalorder %s144_s19, %s144_s19 }
  0x17   :  { %v41_v11 = vsub.f32 0.0, %v29_v7  ;;  %v42_v12 = vsub.f32 0.0, %v30_v8  ;;  %106 = vlog2.f32 %v29_v7 }
  0x18   :  { %v43_v13 = vsub.f32 0.0, %v31_v9  ;;  %108 = vlog2.f32 %v30_v8  ;;  %v44_v20 = vsub.f32 0.0, %v32_v16  ;;  %p151_p11 = por %p150_p10, %p149_p9 }
  0x19   :  { %v45_v14 = vadd.f32 1.0, %v41_v11  ;;  %v54_v15 = vadd.f32 1.0, %v42_v12  ;;  %110 = vlog2.f32 %v31_v9  ;;  %v48_v18 = vmul.f32 -0.5, %v41_v11 }
  0x1a   :  { %v63_v17 = vadd.f32 1.0, %v43_v13  ;;  %v57_v19 = vmul.f32 -0.5, %v42_v12  ;;  %v66_v21 = vmul.f32 -0.5, %v43_v13  ;;  %v72_v22 = vadd.f32 1.0, %v44_v20  ;;  %p152_p12 = pnand %p151_p11, %p145_p8 }
  0x1b   :  { %112 = vlog2.f32 %v45_v14  ;;  %v49_v23 = vadd.f32 1.0, %v48_v18  ;;  %v51_v24 = vand.u32 2147483647, %v41_v11  ;;  %v60_v26 = vand.u32 2147483647, %v42_v12 }
  0x1c   :  { %114 = vlog2.f32 %v54_v15  ;;  %v58_v25 = vadd.f32 1.0, %v57_v19  ;;  %v69_v27 = vand.u32 2147483647, %v43_v13  ;;  %v67_v29 = vadd.f32 1.0, %v66_v21 }
  0x1d   :  { %116 = vlog2.f32 %v63_v17  ;;  %v75_v30 = vmul.f32 -0.5, %v44_v20  ;;  %v50_v33 = vmul.f32 %v49_v23, %v41_v11  ;;  %vm194_vm0 = vcmp.lt.f32.partialorder %v51_v24, 0.0004427343 }
  0x1e   :  { %118 = vlog2.f32 %v32_v16  ;;  %v59_v37 = vmul.f32 %v58_v25, %v42_v12  ;;  %vm198_vm1 = vcmp.lt.f32.partialorder %v60_v26, 0.0004427343  ;;  %vm202_vm2 = vcmp.lt.f32.partialorder %v69_v27, 0.0004427343 }
  0x1f   :  { %120 = vlog2.f32 %v72_v22  ;;  %v68_v43 = vmul.f32 %v67_v29, %v43_v13  ;;  %v76_v44 = vadd.f32 1.0, %v75_v30  ;;  %v78_v48 = vand.u32 2147483647, %v44_v20 }
  0x21   :  { %v107_v28 = vpop.eup %106  ;;  %v77_v56 = vmul.f32 %v76_v44, %v44_v20  ;;  %vm79_vm3 = vcmp.lt.f32.partialorder %v78_v48, 0.0004427343 }
  0x22   :  { %v109_v31 = vpop.eup %108  ;;  %v34_v36 = vmul.f32 0.6931472, %v107_v28 }
  0x23   :  { %v111_v32 = vpop.eup %110  ;;  %v36_v42 = vmul.f32 0.6931472, %v109_v31 }
  0x24   :  { %v38_v47 = vmul.f32 0.6931472, %v111_v32 }
  0x25   :  { %v113_v35 = vpop.eup %112 }
  0x26   :  { %v115_v40 = vpop.eup %114  ;;  %v47_v41 = vmul.f32 0.6931472, %v113_v35 }
  0x27   :  { %v117_v45 = vpop.eup %116  ;;  %v56_v46 = vmul.f32 0.6931472, %v115_v40 }
  0x28   :  { %v119_v49 = vpop.eup %118  ;;  %v53_v50 = vsel %vm194_vm0, %v50_v33, %v47_v41  ;;  %v65_v51 = vmul.f32 0.6931472, %v117_v45 }
  0x29   :  { %v81_v52 = vsub.f32 %v34_v36, %v53_v50  ;;  %v62_v53 = vsel %vm198_vm1, %v59_v37, %v56_v46  ;;  %v121_v57 = vpop.eup %120  ;;  %v40_v59 = vmul.f32 0.6931472, %v119_v49 }
  0x2a   :  { %v82_v54 = vsub.f32 %v36_v42, %v62_v53  ;;  %v71_v55 = vsel %vm202_vm2, %v68_v43, %v65_v51  ;;  %v74_v60 = vmul.f32 0.6931472, %v121_v57 }
  0x2b   :  { %85 = vst [vmem:[#allocation5] sm:$0xff] %v81_v52  ;;  %v83_v58 = vsub.f32 %v38_v47, %v71_v55 }
  0x2c   :  { %86 = vst [vmem:[#allocation5 + $0x8] sm:$0xff] %v82_v54  ;;  %v80_v61 = vsel %vm79_vm3, %v77_v56, %v74_v60 }
  0x2d   :  { %87 = vst [vmem:[#allocation5 + $0x10] sm:$0xff] %v83_v58  ;;  %v84_v62 = vsub.f32 %v40_v59, %v80_v61 }
  0x2f   :  { %88 = vst [vmem:[#allocation5 + $0x18] sm:$0xff] %v84_v62 }
  0x30   :  { %155 = shalt.err (!%p152_p12)
}
  0x31   :  { %s156_s22 = scalar_lea.hbm %s225_s1, 512 }
  0x32   :  { %p157_p13 = scmp.ne.s32.totalorder %s225_s1, %s156_s22  ;;  %p160_p0 = scmp.lt.u32.totalorder %s156_s22, %s225_s1 }
  0x34   :  { %p162_p1 = pnand %p160_p0, %p157_p13 }
  0x36   :  { %165 = shalt.err (!%p162_p1)
}
  0x37   :  { %98 = dma.vmem_to_hbm [thread:$0]  %s96_s18, 512, %s225_s1, [#allocation4]  }
  0x38   :  { %168 = dma.done.wait [#allocation4], 512  }
  0x39   :  { %169 = vsyncadd [#allocation4], 4294966784 }
  0x3a   :  { %102 = vsyncpa [#allocation3], 1 }
  0x3b   :  { %103 = vsyncpa [#allocation4], 1 }

</bundles_post_ra>
